<compile_context>
chip_gen: v5e
topology: v5e:2x2
jax: 0.10.0
libtpu: 0.0.40
codegen_flags: <defaults>
</compile_context>

<pallas_src>
import jax
import jax.numpy as jnp
from jax.experimental import pallas as pl
from jax.experimental.pallas import tpu as pltpu


def _round_up(a, m):
    return -(-a // m) * m


def _make_kernel(n_layers):
    """One batch tile: chain of n_layers Linear layers (no activations).

    With collapsed params n_layers == 1 and the body is a single lane-dense
    contraction; the loop below is only used by the un-collapsed fallback path.
    """

    def kernel(*refs):
        x_ref, o_ref = refs[0], refs[-1]
        p = refs[1:-1]  # (w, b) pairs; last layer's W kept in PyTorch (out, in) layout
        h = x_ref[...]
        for li in range(n_layers - 1):
            w = p[2 * li][...]        # (in, out)  -- pre-transposed in prepare_params
            b = p[2 * li + 1][...]    # (1, out)
            h = jnp.dot(h.astype(w.dtype), w,
                        preferred_element_type=jnp.float32) + b
        w_last = p[-2][...]           # (1, K)   K = hidden (chained) or D_in (collapsed)
        b_last = p[-1][...]           # (1, 1)
        # Lane-dense epilogue: NT contraction (1,K).(tb,K)^T -> (1, tb); written
        # as one unmasked, lane-dense row block (vs tb masked 1-lane stores for
        # a (tb,1) result).  Cast the tiny weight row to h's dtype so a bf16 x
        # stream hits the native bf16 MXU path with f32 accumulation.
        y_t = jax.lax.dot_general(
            w_last.astype(h.dtype), h,
            dimension_numbers=(((1,), (1,)), ((), ())),
            preferred_element_type=jnp.float32)
        o_ref[...] = (y_t + b_last).astype(o_ref.dtype)

    return kernel


def collapse_params(params):
    """Fold the activation-free chain into a single effective Linear layer.

    params: list of (W, b), W shaped (out, in) like PyTorch nn.Linear.
    Returns [(W_eff, b_eff)] with W_eff (1, D_in), b_eff (1,).  Exact up to
    fp32 associativity (folding done once, in f32 at 'highest' precision).
    """
    W0, b0 = params[0]
    A = jnp.asarray(W0, jnp.float32).T                      # (D_in, d1)
    c = jnp.asarray(b0, jnp.float32)                        # (d1,)
    for W, b in params[1:]:
        Wt = jnp.asarray(W, jnp.float32).T                  # (d_k, d_k+1)
        A = jnp.dot(A, Wt, precision="highest")
        c = jnp.dot(c, Wt, precision="highest") + jnp.asarray(b, jnp.float32)
    return [(A.T, c)]                                       # W_eff (1, D_in), b_eff (1,)


def prepare_params(params, param_dtype=jnp.float32):
    """One-time glue (hoisted out of the forward path).

    Returns a flat tuple (w0, b0, w1, b1, ...):
      * all but the last W are pre-transposed to (in, out),
      * the last W stays (out, in) for the lane-dense final contraction,
      * biases become (1, out) rows (f32).
    """
    flat = []
    n = len(params)
    for li, (W, b) in enumerate(params):
        if li < n - 1:
            flat.append(jnp.asarray(W, param_dtype).T)            # (in, out)
        else:
            flat.append(jnp.asarray(W, param_dtype))              # (out, in)
        flat.append(jnp.asarray(b, jnp.float32).reshape(1, -1))   # (1, out)
    return tuple(flat)


def nested_linear_forward(x, flat_params, *, batch_tile=8192, input_dtype=None):
    """x: (B, D_in). flat_params: prepare_params(collapse_params(params)) [fast path]
    or prepare_params(params) [per-layer fallback]."""
    B, D_in = x.shape
    n_layers = len(flat_params) // 2
    if n_layers == 1:
        assert flat_params[0].shape[1] == D_in
    else:
        assert flat_params[0].shape[0] == D_in
    D_out = flat_params[-2].shape[0]  # last W kept as (out, in)
    assert D_out == 1

    # Optional bf16 x stream (HBM-bound after the collapse -> ~2x at the roofline).
    if input_dtype is not None and x.dtype != jnp.dtype(input_dtype):
        x = x.astype(input_dtype)
    itemsize = int(x.dtype.itemsize)

    # Cap the batch tile so the double-buffered, lane-padded x tile stays under a
    # ~12 MiB budget (v5e 16 MiB scoped-VMEM default; v7x 64 MiB physical VMEM).
    row_bytes = _round_up(D_in, 128) * itemsize
    vmem_budget = 12 * (1 << 20)
    max_tb = max(128, (vmem_budget // (2 * row_bytes)) // 128 * 128)
    batch_tile = min(batch_tile, max_tb)

    # Tile count: big tiles amortize the ~0.35 us/step grid overhead; >= 2 steps
    # once B >= 256 so v7x megacore ("parallel" batch axis) can use both TCs.
    if B > batch_tile:
        n_tiles = -(-B // batch_tile)
    elif B >= 256:
        n_tiles = 2
    else:
        n_tiles = 1
    tb = _round_up(-(-B // n_tiles), 128)   # lane-aligned -> unmasked lane-dense stores
    B_pad = n_tiles * tb
    if B_pad != B:
        x = jnp.pad(x, ((0, B_pad - B), (0, 0)))

    in_specs = [pl.BlockSpec((tb, D_in), lambda i: (i, 0))]
    for arr in flat_params:
        # Weights / biases are tiny: full array, replicated across the batch grid.
        in_specs.append(pl.BlockSpec(arr.shape, lambda i: (0, 0)))
    out_spec = pl.BlockSpec((1, tb), lambda i: (0, i))

    w_sizes = [int(w.size) for w in flat_params[0::2]]
    b_sizes = [int(b.size) for b in flat_params[1::2]]
    flops = 2 * B_pad * sum(w_sizes) + B_pad * sum(b_sizes)
    bytes_accessed = (int(x.size) * itemsize
                      + B_pad * 4
                      + sum(int(a.size) * int(a.dtype.itemsize) for a in flat_params))

    out = pl.pallas_call(
        _make_kernel(n_layers),
        out_shape=jax.ShapeDtypeStruct((1, B_pad), jnp.float32),
        grid_spec=pltpu.PrefetchScalarGridSpec(
            num_scalar_prefetch=0,
            grid=(n_tiles,),
            in_specs=in_specs,
            out_specs=out_spec,
        ),
        compiler_params=pltpu.CompilerParams(
            dimension_semantics=("parallel",)),
        cost_estimate=pl.CostEstimate(
            flops=flops, transcendentals=0, bytes_accessed=bytes_accessed),
    )(x, *flat_params)

    # (1, B_pad) lane-dense slab -> (B, 1) like PyTorch; drop padding rows.
    return out.reshape(B_pad, 1)[:B]


def init_params(key, input_size, hidden_nodes, hidden_layers):
    """Deterministic init mimicking the shapes of NestedLinear.__init__."""
    dims = [(input_size, hidden_nodes)]
    dims += [(hidden_nodes, hidden_nodes)] * hidden_layers
    dims += [(hidden_nodes, 1)]
    params = []
    for fan_in, fan_out in dims:
        key, kw, kb = jax.random.split(key, 3)
        bound = 1.0 / jnp.sqrt(fan_in)
        W = jax.random.uniform(kw, (fan_out, fan_in), jnp.float32, -bound, bound)
        b = jax.random.uniform(kb, (fan_out,), jnp.float32, -bound, bound)
        params.append((W, b))
    return params


def reference_forward(x, params):
    h = x
    for W, b in params:
        h = jnp.dot(h, W.T, precision="highest") + b
    return h


if __name__ == "__main__":
    # Small shapes consistent with the module: input=64, hidden=32, 3 hidden layers.
    B, INPUT_SIZE, HIDDEN, HIDDEN_LAYERS = 8, 64, 32, 3

    key = jax.random.PRNGKey(0)
    key, kx = jax.random.split(key)
    x = jax.random.normal(kx, (B, INPUT_SIZE), dtype=jnp.float32)

    params = init_params(key, INPUT_SIZE, HIDDEN, HIDDEN_LAYERS)
    flat_fast = prepare_params(collapse_params(params))   # collapsed: one (1, D_in) weight
    flat_chain = prepare_params(params)                   # per-layer fallback path

    fwd = jax.jit(nested_linear_forward, static_argnames=("batch_tile", "input_dtype"))

    # 1) Collapsed fast path, small batch (single 128-row tile).
    out = jax.block_until_ready(fwd(x, flat_fast))
    ref = reference_forward(x, params)
    assert out.shape == (B, 1), out.shape
    assert jnp.allclose(out, ref, atol=1e-4, rtol=1e-4), \
        f"mismatch (collapsed): max err {jnp.max(jnp.abs(out - ref))}"

    # 2) Collapsed fast path, ragged batch -> 2 lane-aligned tiles (v7x megacore path).
    B2 = 300
    key, kx2 = jax.random.split(key)
    x2 = jax.random.normal(kx2, (B2, INPUT_SIZE), dtype=jnp.float32)
    out2 = jax.block_until_ready(fwd(x2, flat_fast))
    ref2 = reference_forward(x2, params)
    assert out2.shape == (B2, 1), out2.shape
    assert jnp.allclose(out2, ref2, atol=1e-4, rtol=1e-4), \
        f"mismatch (multi-tile): max err {jnp.max(jnp.abs(out2 - ref2))}"

    # 3) Un-collapsed per-layer fallback (kept for when activations are added).
    out3 = jax.block_until_ready(fwd(x, flat_chain))
    assert out3.shape == (B, 1), out3.shape
    assert jnp.allclose(out3, ref, atol=1e-4, rtol=1e-4), \
        f"mismatch (chained): max err {jnp.max(jnp.abs(out3 - ref))}"

    print("KERNEL_OK")
</pallas_src>

<mosaic_0001>
module attributes {stable_mosaic.version = 11 : i64} {
  func.func @kernel(%arg0: i32, %arg1: memref<128x64xf32, #tpu.memory_space<vmem>>, %arg2: memref<1x64xf32, #tpu.memory_space<vmem>>, %arg3: memref<1x1xf32, #tpu.memory_space<vmem>>, %arg4: memref<1x128xf32, #tpu.memory_space<vmem>>) attributes {dimension_semantics = [#tpu.dimension_semantics<parallel>], iteration_bounds = array<i64: 1>, scalar_prefetch = 0 : i64, scratch_operands = 0 : i64, tpu.core_type = #tpu.core_type<tc>, window_params = [{transform_indices = @transform_0, window_bounds = array<i64: 128, 64>}, {pipeline_mode = #tpu.pipeline_mode<synchronous>, transform_indices = @transform_1, window_bounds = array<i64: 1, 64>}, {pipeline_mode = #tpu.pipeline_mode<synchronous>, transform_indices = @transform_2, window_bounds = array<i64: 1, 1>}, {transform_indices = @transform_3, window_bounds = array<i64: 1, 128>}]} {
    %c0 = arith.constant 0 : index
    %c0_0 = arith.constant 0 : index
    %0 = vector.load %arg1[%c0, %c0_0] : memref<128x64xf32, #tpu.memory_space<vmem>>, vector<128x64xf32>
    %c0_1 = arith.constant 0 : index
    %c0_2 = arith.constant 0 : index
    %1 = vector.load %arg2[%c0_1, %c0_2] : memref<1x64xf32, #tpu.memory_space<vmem>>, vector<1x64xf32>
    %c0_3 = arith.constant 0 : index
    %c0_4 = arith.constant 0 : index
    %2 = vector.load %arg3[%c0_3, %c0_4] : memref<1x1xf32, #tpu.memory_space<vmem>>, vector<1x1xf32>
    %cst = arith.constant dense<0.000000e+00> : vector<1x128xf32>
    %3 = tpu.matmul %1, %0, %cst {dimension_numbers = #tpu.dot_dimension_numbers<[1], [1], [0], [0], [0, 0, 1, 0], [], []>} : vector<1x64xf32>, vector<128x64xf32>, vector<1x128xf32> -> vector<1x128xf32>
    %4 = vector.broadcast %2 : vector<1x1xf32> to vector<1x128xf32>
    %5 = arith.addf %3, %4 : vector<1x128xf32>
    %c0_5 = arith.constant 0 : index
    %c0_6 = arith.constant 0 : index
    %6 = vector.load %arg4[%c0_5, %c0_6] : memref<1x128xf32, #tpu.memory_space<vmem>>, vector<1x128xf32>
    tpu.vector_store %arg4[%c0_5, %c0_6], %5 {strides = array<i32>} : memref<1x128xf32, #tpu.memory_space<vmem>>, vector<1x128xf32>,
    return
  }
  func.func @transform_0(%arg0: i32) -> (i32, i32) {
    %c0_i32 = arith.constant 0 : i32
    %c0_i32_0 = arith.constant 0 : i32
    return %arg0, %c0_i32 : i32, i32
  }
  func.func @transform_1(%arg0: i32) -> (i32, i32) {
    %c0_i32 = arith.constant 0 : i32
    %c0_i32_0 = arith.constant 0 : i32
    %c0_i32_1 = arith.constant 0 : i32
    return %c0_i32, %c0_i32_0 : i32, i32
  }
  func.func @transform_2(%arg0: i32) -> (i32, i32) {
    %c0_i32 = arith.constant 0 : i32
    %c0_i32_0 = arith.constant 0 : i32
    %c0_i32_1 = arith.constant 0 : i32
    return %c0_i32, %c0_i32_0 : i32, i32
  }
  func.func @transform_3(%arg0: i32) -> (i32, i32) {
    %c0_i32 = arith.constant 0 : i32
    %c0_i32_0 = arith.constant 0 : i32
    return %c0_i32, %arg0 : i32, i32
  }
}

</mosaic_0001>

<bundles_post_ra>
// kernel: nested_linear_forward.1
= control target key start
LH: loop header
LB: loop body
LE: loop exit
PB: predicated region body
PF: predicated region fallthrough
CT: control target
= control target key end

     0   :  { %vm40_vm0 = vcmask 523264   ;;  %v136_v10 = vmov 0   ;;  %s231_s0 = inlined_call_operand.vmem [shape: f32[128,64], index: 0, kind: input, shape index: {}]   ;;  %s232_s2 = inlined_call_operand.<no memory space> [shape: f32[1,1], index: 2, kind: input, shape index: {}]   ;;  %s233_s1 = inlined_call_operand.vmem [shape: f32[1,64], index: 1, kind: input, shape index: {}]   ;;  %s234_s3 = inlined_call_operand.vmem [shape: f32[1,128], index: 3, kind: output, shape index: {}]  }
   0x1   :  { %v31_v0 = vld [vmem:[%s231_s0 + $0x78] sm:$0xff]  ;;  %v30_v1 = vld [vmem:[%s231_s0 + $0x70] sm:$0xff]  ;;  %v29_v2 = vld [vmem:[%s231_s0 + $0x68] sm:$0xff]  ;;  %v8_v9 = vstv %s232_s2  ;;  %135 = vset.pattern.permute.xlu0 %v136_v10 }
   0x2   :  { %117 = vmatpush.xpose.msk.msra.mxu0 %vm40_vm0, %v31_v0  ;;  %v28_v3 = vld [vmem:[%s231_s0 + $0x60] sm:$0xff]  ;;  %v27_v4 = vld [vmem:[%s231_s0 + $0x58] sm:$0xff]  ;;  %v26_v5 = vld [vmem:[%s231_s0 + $0x50] sm:$0xff]  ;;  %9 = vst [vmem:[#allocation2] sm:$0x1] %v8_v9 }
   0x3   :  { %v25_v6 = vld [vmem:[%s231_s0 + $0x48] sm:$0xff]  ;;  %v24_v7 = vld [vmem:[%s231_s0 + $0x40] sm:$0xff]  ;;  %v23_v8 = vld [vmem:[%s231_s0 + $0x38] sm:$0xff] }
   0x4   :  { %v22_v11 = vld [vmem:[%s231_s0 + $0x30] sm:$0xff]  ;;  %v21_v12 = vld [vmem:[%s231_s0 + $0x28] sm:$0xff]  ;;  %v20_v14 = vld [vmem:[%s231_s0 + $0x20] sm:$0xff] }
   0x5   :  { %v19_v15 = vld [vmem:[%s231_s0 + $0x18] sm:$0xff]  ;;  %v18_v16 = vld [vmem:[%s231_s0 + $0x10] sm:$0xff]  ;;  %v17_v17 = vld [vmem:[%s231_s0 + $0x8] sm:$0xff] }
   0x6   :  { %118 = vmatpush.xpose.msk.msra.mxu0 %vm40_vm0, %v30_v1  ;;  %v16_v18 = vld [vmem:[%s231_s0] sm:$0xff] }
   0x7   :  { %v32_v19 = vld [vmem:[%s233_s1] sm:$0x1] }
   0x9   :  { %v33_v13 = vld [vmem:[#allocation2] sm:$0x1] }
   0xa   :  { %119 = vmatpush.xpose.msk.msra.mxu0 %vm40_vm0, %v29_v2  ;;  %36 = vperm.xlu0 %135, %v33_v13  }
   0xe   :  { %120 = vmatpush.xpose.msk.msra.mxu0 %vm40_vm0, %v28_v3 }
  0x12   :  { %121 = vmatpush.xpose.msk.msra.mxu0 %vm40_vm0, %v27_v4 }
  0x16   :  { %122 = vmatpush.xpose.msk.msra.mxu0 %vm40_vm0, %v26_v5 }
  0x1a   :  { %123 = vmatpush.xpose.msk.msra.mxu0 %vm40_vm0, %v25_v6 }
  0x1e   :  { %124 = vmatpush.xpose.msk.msra.mxu0 %vm40_vm0, %v24_v7 }
  0x22   :  { %125 = vmatpush.xpose.msk.msra.mxu0 %vm40_vm0, %v23_v8 }
  0x26   :  { %126 = vmatpush.xpose.msk.msra.mxu0 %vm40_vm0, %v22_v11 }
  0x2a   :  { %127 = vmatpush.xpose.msk.msra.mxu0 %vm40_vm0, %v21_v12 }
  0x2e   :  { %128 = vmatpush.xpose.msk.msra.mxu0 %vm40_vm0, %v20_v14 }
  0x32   :  { %129 = vmatpush.xpose.msk.msra.mxu0 %vm40_vm0, %v19_v15 }
  0x36   :  { %130 = vmatpush.xpose.msk.msra.mxu0 %vm40_vm0, %v18_v16 }
  0x3a   :  { %131 = vmatpush.xpose.msk.msra.mxu0 %vm40_vm0, %v17_v17 }
  0x3e   :  { %132 = vmatpush.xpose.msk.msra.mxu0 %vm40_vm0, %v16_v18 }
  0x41   :  { %133 = vmatmul.msk.f32.vlgmr.msra.gmra.mxu0 %vm40_vm0, %v32_v19 }
  0x7c   :  { %v37_v20 = vpop.permute.xlu0 %36 }
  0x7d   :  { %v39_v21 = vperm.slane %v37_v20, 0 }
  0xbe   :  { %v109_v22 = vpop.f32.mrf.mxu0 }
  0xbf   :  { %v110_v23 = vadd.f32 %v109_v22, %v39_v21 }
  0xc1   :  { %112 = vst [vmem:[%s234_s3] sm:$0x1] %v110_v23 }

</bundles_post_ra>
